<compile_context>
chip_gen: v6e
topology: v6e:2x2x1
jax: 0.10.0
libtpu: 0.0.40
codegen_flags: <defaults>
</compile_context>

<pallas_src>
import functools

import jax
import jax.numpy as jnp
from jax import lax
from jax.experimental import pallas as pl
from jax.experimental.pallas import tpu as pltpu

TAU = 0.1
MASK_BIG = 1.0e9     # same self-mask magnitude as the PyTorch module
NORM_EPS = 1e-12     # F.normalize eps


def _round_up(x: int, m: int) -> int:
    return (x + m - 1) // m * m


def _l2_normalize(x):
    # F.normalize(p=2, dim=-1): x / max(||x||_2, eps). Zero rows stay zero.
    norm = jnp.sqrt(jnp.sum(x * x, axis=-1, keepdims=True))
    return x / jnp.maximum(norm, NORM_EPS)


def _simclr_kernel(tgt_ref, qa_ref, qb_ref, keys_ref, stats_ref, *,
                   tau, batch, b_pad, tile_q):
    """One grid step: `tile_q` query rows vs. all resident keys.

    tgt_ref  : (tile_q, 1)       f32  CE target per row (<qa_i, qb_i>/tau).
    qa_ref   : (tile_q, d_pad)   bf16 normalized view-a query rows.
    qb_ref   : (tile_q, d_pad)   bf16 normalized view-b query rows.
    keys_ref : (d_pad, 2*b_pad)  bf16 normalized transposed keys [ka^T | kb^T].
    stats_ref: (8, 128) f32; [0,0]=sum(ce_a) [0,1]=sum(ce_b) [0,2]=#correct.
    """
    i = pl.program_id(0)
    row0 = i * tile_q
    inv_tau = 1.0 / tau
    two_b = 2 * b_pad

    labels = lax.broadcasted_iota(jnp.int32, (tile_q, 1), 0) + row0   # global rows
    col = lax.broadcasted_iota(jnp.int32, (tile_q, two_b), 1)
    in_a_half = col < b_pad                         # ka columns (self-view for "a")
    key_idx = jnp.where(in_a_half, col, col - b_pad)

    if batch < b_pad:                                # static Python branch
        pad_mask = jnp.where(key_idx < batch, 0.0, MASK_BIG)   # padded key cols
        row_valid = labels < batch                              # padded query rows
    else:
        pad_mask = 0.0
        row_valid = None

    # masks subtracted from the logits, exactly as in the PyTorch module
    mask_a = jnp.where(in_a_half & (col == labels), MASK_BIG, 0.0) + pad_mask
    mask_b = jnp.where(col == (labels + b_pad), MASK_BIG, 0.0) + pad_mask

    tgt = tgt_ref[...]                               # (tile_q, 1) f32
    keys = keys_ref[...]                             # (d_pad, 2*b_pad) bf16
    dn = (((1,), (0,)), ((), ()))                    # canonical [M,K] x [K,N]

    def row_ce(logits):
        m = jnp.max(logits, axis=-1, keepdims=True)
        s = jnp.sum(jnp.exp(logits - m), axis=-1, keepdims=True)
        ce = m + jnp.log(s) - tgt
        if row_valid is not None:
            ce = jnp.where(row_valid, ce, 0.0)
        return jnp.sum(ce), m

    # ---- view "a": one matmul against the fused [ka | kb] keys covers both
    # logits_aa and logits_ab; logsumexp is permutation-invariant so the column
    # order vs. the original cat([l_ab, l_aa]) does not matter for the loss.
    la = lax.dot_general(qa_ref[...], keys, dn,
                         preferred_element_type=jnp.float32) * inv_tau - mask_a
    loss_a_sum, m_a = row_ce(la)

    # accuracy: first-occurrence argmax in the ORIGINAL [l_ab | l_aa] order,
    # reusing the row max m_a (no extra cross-lane max reductions).
    orig_idx = jnp.where(in_a_half, col + b_pad, col - b_pad)
    cand = jnp.where(la == m_a, orig_idx, two_b)
    pred = jnp.min(cand, axis=-1, keepdims=True)
    correct = pred == labels
    if row_valid is not None:
        correct = correct & row_valid
    n_correct = jnp.sum(jnp.where(correct, 1.0, 0.0))

    # ---- view "b": same fused keys, different self-mask; loss only.
    lb = lax.dot_general(qb_ref[...], keys, dn,
                         preferred_element_type=jnp.float32) * inv_tau - mask_b
    loss_b_sum, _ = row_ce(lb)

    # ---- single lane-dense (8,128) per-tile stats tile (full unmasked store).
    # Construction cost is 2 iotas + 3 selects once per grid step (~free); kept
    # as a full-tile store rather than partial scalar writes for robustness.
    sub = lax.broadcasted_iota(jnp.int32, (8, 128), 0)
    lane = lax.broadcasted_iota(jnp.int32, (8, 128), 1)
    slot = jnp.where(sub == 0, lane, 128)
    stats_ref[...] = jnp.where(slot == 0, loss_a_sum,
                     jnp.where(slot == 1, loss_b_sum,
                     jnp.where(slot == 2, n_correct, 0.0)))


def simclr_loss(q_a, q_b, temperature=TAU):
    """q_a, q_b: (B, D) embeddings (aug1_embed / aug2_embed), single device."""
    assert q_a.shape == q_b.shape and q_a.ndim == 2
    batch, dim = q_a.shape

    # ---- generation-aware tiling -------------------------------------------
    try:
        vmem_cap = int(pltpu.get_tpu_info().vmem_capacity_bytes)
    except Exception:
        vmem_cap = 64 * 1024 * 1024
    small_vmem = vmem_cap < (100 << 20)        # v7x-like: 64 MiB/core, 2 TCs
    max_tile = 256 if small_vmem else 512      # v5e/v6e: 128 MiB VMEM, 1 TC

    tile_q = min(max_tile, _round_up(batch, 8))
    b_pad = _round_up(batch, tile_q)
    # v7x: ensure >= 2 grid steps so both TensorCores get work under "parallel".
    if small_vmem and (b_pad // tile_q) < 2 and tile_q >= 16:
        tile_q = max(8, _round_up(tile_q // 2, 8))
        b_pad = _round_up(batch, tile_q)
    num_tiles = b_pad // tile_q
    d_pad = _round_up(dim, 128)

    # ---- hoisted preprocessing (runs ONCE, fused by XLA) --------------------
    qa_n = _l2_normalize(q_a.astype(jnp.float32))
    qb_n = _l2_normalize(q_b.astype(jnp.float32))
    # CE target: diag(l_ab) == <qa_i, qb_i>/tau, kept in f32.
    tgt = jnp.sum(qa_n * qb_n, axis=-1, keepdims=True) / temperature     # (B, 1)

    pad_r, pad_c = b_pad - batch, d_pad - dim
    qa_p = jnp.pad(qa_n, ((0, pad_r), (0, pad_c))).astype(jnp.bfloat16)
    qb_p = jnp.pad(qb_n, ((0, pad_r), (0, pad_c))).astype(jnp.bfloat16)
    tgt_p = jnp.pad(tgt, ((0, pad_r), (0, 0)))

    # resident key matrix: normalized, bf16, pre-transposed and fused [ka^T|kb^T]
    keys = jnp.concatenate([qa_p, qb_p], axis=0).T                # (d_pad, 2*b_pad)

    vmem_limit = int(min(vmem_cap * 3 // 4, 100 * 1024 * 1024))

    kernel = functools.partial(_simclr_kernel, tau=float(temperature),
                               batch=batch, b_pad=b_pad, tile_q=tile_q)

    stats = pl.pallas_call(
        kernel,
        out_shape=jax.ShapeDtypeStruct((num_tiles, 8, 128), jnp.float32),
        grid=(num_tiles,),
        in_specs=[
            pl.BlockSpec((tile_q, 1), lambda i: (i, 0)),          # CE target rows
            pl.BlockSpec((tile_q, d_pad), lambda i: (i, 0)),      # query tile a
            pl.BlockSpec((tile_q, d_pad), lambda i: (i, 0)),      # query tile b
            pl.BlockSpec((d_pad, 2 * b_pad), lambda i: (0, 0)),   # resident keys
        ],
        out_specs=pl.BlockSpec((None, 8, 128), lambda i: (i, 0, 0)),
        compiler_params=pltpu.CompilerParams(
            dimension_semantics=("parallel",),                    # megacore on v7x
            vmem_limit_bytes=vmem_limit,
        ),
    )(tgt_p, qa_p, qb_p, keys)

    loss_a = jnp.sum(stats[:, 0, 0]) / batch
    loss_b = jnp.sum(stats[:, 0, 1]) / batch
    n_correct = jnp.sum(stats[:, 0, 2])
    loss = 0.5 * (loss_a + loss_b)
    acc = 100.0 * n_correct / batch
    return {"loss": loss, "ssl_loss": loss, "ssl_acc": acc}


def _reference(q_a, q_b, temperature=TAU, matmul_dtype=jnp.float32):
    """Pure-JAX reference (single device). With matmul_dtype=bf16 it mirrors the
    kernel's numerics (bf16 matmul operands, f32 accumulation, f32 CE target)."""
    qa = q_a / jnp.maximum(jnp.linalg.norm(q_a, axis=-1, keepdims=True), NORM_EPS)
    qb = q_b / jnp.maximum(jnp.linalg.norm(q_b, axis=-1, keepdims=True), NORM_EPS)
    B = qa.shape[0]
    labels = jnp.arange(B)
    mask = jax.nn.one_hot(labels, B) * MASK_BIG
    qa_m = qa.astype(matmul_dtype).astype(jnp.float32)
    qb_m = qb.astype(matmul_dtype).astype(jnp.float32)
    l_aa = qa_m @ qa_m.T / temperature - mask
    l_bb = qb_m @ qb_m.T / temperature - mask
    l_ab = qa_m @ qb_m.T / temperature
    l_ba = qb_m @ qa_m.T / temperature
    tgt = jnp.sum(qa * qb, axis=-1) / temperature

    def ce(cross, self_):
        logits = jnp.concatenate([cross, self_], axis=1)
        return jnp.mean(jax.nn.logsumexp(logits, axis=-1) - tgt)

    loss = 0.5 * (ce(l_ab, l_aa) + ce(l_ba, l_bb))
    pred = jnp.argmax(jnp.concatenate([l_ab, l_aa], axis=1), axis=-1)
    acc = 100.0 * jnp.sum(pred == labels) / B
    return loss, acc


if __name__ == "__main__":
    B, D = 8, 32
    key = jax.random.PRNGKey(0)
    k1, k2 = jax.random.split(key)
    # Deterministic synthetic positives: aug2 is a perturbed copy of aug1.
    q_a = jax.random.normal(k1, (B, D), dtype=jnp.float32)
    q_b = q_a + 0.1 * jax.random.normal(k2, (B, D), dtype=jnp.float32)

    out = simclr_loss(q_a, q_b)
    jax.block_until_ready(out["loss"])
    jax.block_until_ready(out["ssl_acc"])

    # Numerics-matched reference (bf16 matmul path) — tight check.
    loss_m, acc_m = _reference(q_a, q_b, matmul_dtype=jnp.bfloat16)
    assert jnp.allclose(out["loss"], loss_m, rtol=1e-3, atol=1e-3), (out["loss"], loss_m)
    assert jnp.allclose(out["ssl_acc"], acc_m, atol=1e-3), (out["ssl_acc"], acc_m)

    # Full-f32 PyTorch-semantics reference — loose check (bf16 matmul drift).
    loss_f, acc_f = _reference(q_a, q_b, matmul_dtype=jnp.float32)
    assert jnp.allclose(out["loss"], loss_f, atol=5e-2), (out["loss"], loss_f)
    assert jnp.allclose(out["ssl_acc"], acc_f, atol=1e-3), (out["ssl_acc"], acc_f)

    print("KERNEL_OK")
</pallas_src>

<mosaic_0001>
module attributes {stable_mosaic.version = 11 : i64} {
  func.func @_simclr_kernel(%arg0: i32, %arg1: memref<8x1xf32, #tpu.memory_space<vmem>>, %arg2: memref<8x128xbf16, #tpu.memory_space<vmem>>, %arg3: memref<8x128xbf16, #tpu.memory_space<vmem>>, %arg4: memref<128x16xbf16, #tpu.memory_space<vmem>>, %arg5: memref<1x8x128xf32, #tpu.memory_space<vmem>>) attributes {dimension_semantics = [#tpu.dimension_semantics<parallel>], iteration_bounds = array<i64: 1>, scalar_prefetch = 0 : i64, scratch_operands = 0 : i64, tpu.core_type = #tpu.core_type<tc>, window_params = [{transform_indices = @transform_0, window_bounds = array<i64: 8, 1>}, {transform_indices = @transform_1, window_bounds = array<i64: 8, 128>}, {transform_indices = @transform_2, window_bounds = array<i64: 8, 128>}, {pipeline_mode = #tpu.pipeline_mode<synchronous>, transform_indices = @transform_3, window_bounds = array<i64: 128, 16>}, {transform_indices = @transform_4, window_bounds = array<i64: 1, 8, 128>}]} {
    %c8_i32 = arith.constant 8 : i32
    %0 = arith.muli %arg0, %c8_i32 : i32
    %1 = tpu.iota {dimensions = array<i32: 0>} : vector<8x1xi32>
    %2 = vector.broadcast %0 : i32 to vector<8x1xi32>
    %3 = arith.addi %1, %2 : vector<8x1xi32>
    %4 = tpu.iota {dimensions = array<i32: 1>} : vector<8x16xi32>
    %c8_i32_0 = arith.constant 8 : i32
    %5 = vector.broadcast %c8_i32_0 : i32 to vector<8x16xi32>
    %6 = arith.cmpi slt, %4, %5 : vector<8x16xi32>
    %7 = vector.broadcast %3 : vector<8x1xi32> to vector<8x16xi32>
    %8 = arith.cmpi eq, %4, %7 : vector<8x16xi32>
    %9 = arith.andi %6, %8 : vector<8x16xi1>
    %cst = arith.constant 1.000000e+09 : f32
    %cst_1 = arith.constant 0.000000e+00 : f32
    %10 = vector.broadcast %cst : f32 to vector<8x16xf32>
    %11 = vector.broadcast %cst_1 : f32 to vector<8x16xf32>
    %12 = arith.select %9, %10, %11 : vector<8x16xi1>, vector<8x16xf32>
    %cst_2 = arith.constant 0.000000e+00 : f32
    %13 = vector.broadcast %cst_2 : f32 to vector<8x16xf32>
    %14 = arith.addf %12, %13 : vector<8x16xf32>
    %c8_i32_3 = arith.constant 8 : i32
    %15 = vector.broadcast %c8_i32_3 : i32 to vector<8x1xi32>
    %16 = arith.addi %3, %15 : vector<8x1xi32>
    %17 = vector.broadcast %16 : vector<8x1xi32> to vector<8x16xi32>
    %18 = arith.cmpi eq, %4, %17 : vector<8x16xi32>
    %cst_4 = arith.constant 1.000000e+09 : f32
    %cst_5 = arith.constant 0.000000e+00 : f32
    %19 = vector.broadcast %cst_4 : f32 to vector<8x16xf32>
    %20 = vector.broadcast %cst_5 : f32 to vector<8x16xf32>
    %21 = arith.select %18, %19, %20 : vector<8x16xi1>, vector<8x16xf32>
    %cst_6 = arith.constant 0.000000e+00 : f32
    %22 = vector.broadcast %cst_6 : f32 to vector<8x16xf32>
    %23 = arith.addf %21, %22 : vector<8x16xf32>
    %c0 = arith.constant 0 : index
    %c0_7 = arith.constant 0 : index
    %24 = vector.load %arg1[%c0, %c0_7] : memref<8x1xf32, #tpu.memory_space<vmem>>, vector<8x1xf32>
    %c0_8 = arith.constant 0 : index
    %c0_9 = arith.constant 0 : index
    %25 = vector.load %arg4[%c0_8, %c0_9] : memref<128x16xbf16, #tpu.memory_space<vmem>>, vector<128x16xbf16>
    %c0_10 = arith.constant 0 : index
    %c0_11 = arith.constant 0 : index
    %26 = vector.load %arg2[%c0_10, %c0_11] : memref<8x128xbf16, #tpu.memory_space<vmem>>, vector<8x128xbf16>
    %cst_12 = arith.constant dense<0.000000e+00> : vector<8x16xf32>
    %27 = tpu.matmul %26, %25, %cst_12 {dimension_numbers = #tpu.dot_dimension_numbers<[1], [0], [0], [1], [0, 0, 1, 1], [], []>} : vector<8x128xbf16>, vector<128x16xbf16>, vector<8x16xf32> -> vector<8x16xf32>
    %cst_13 = arith.constant 1.000000e+01 : f32
    %28 = vector.broadcast %cst_13 : f32 to vector<8x16xf32>
    %29 = arith.mulf %27, %28 : vector<8x16xf32>
    %30 = arith.subf %29, %14 : vector<8x16xf32>
    %cst_14 = arith.constant dense<0xFF800000> : vector<8xf32>
    %31 = vector.multi_reduction <maximumf>, %30, %cst_14 [1] : vector<8x16xf32> to vector<8xf32>
    %32 = vector.shape_cast %31 : vector<8xf32> to vector<8x1xf32>
    %33 = vector.broadcast %32 : vector<8x1xf32> to vector<8x16xf32>
    %34 = arith.subf %30, %33 : vector<8x16xf32>
    %35 = math.exp %34 : vector<8x16xf32>
    %cst_15 = arith.constant dense<0.000000e+00> : vector<8xf32>
    %36 = vector.multi_reduction <add>, %35, %cst_15 [1] : vector<8x16xf32> to vector<8xf32>
    %37 = vector.shape_cast %36 : vector<8xf32> to vector<8x1xf32>
    %38 = math.log %37 : vector<8x1xf32>
    %39 = arith.addf %32, %38 : vector<8x1xf32>
    %40 = arith.subf %39, %24 : vector<8x1xf32>
    %41 = vector.shape_cast %40 : vector<8x1xf32> to vector<1x8x1xf32>
    %cst_16 = arith.constant dense<0.000000e+00> : vector<1xf32>
    %42 = vector.multi_reduction <add>, %41, %cst_16 [1, 2] : vector<1x8x1xf32> to vector<1xf32>
    %43 = vector.shape_cast %42 : vector<1xf32> to vector<1x1x1xf32>
    %44 = vector.extract %43[0, 0, 0] : f32 from vector<1x1x1xf32>
    %c8_i32_17 = arith.constant 8 : i32
    %45 = vector.broadcast %c8_i32_17 : i32 to vector<8x16xi32>
    %46 = arith.addi %4, %45 : vector<8x16xi32>
    %c8_i32_18 = arith.constant 8 : i32
    %47 = vector.broadcast %c8_i32_18 : i32 to vector<8x16xi32>
    %48 = arith.subi %4, %47 : vector<8x16xi32>
    %49 = arith.select %6, %46, %48 : vector<8x16xi1>, vector<8x16xi32>
    %50 = vector.broadcast %32 : vector<8x1xf32> to vector<8x16xf32>
    %51 = arith.cmpf oeq, %30, %50 : vector<8x16xf32>
    %c16_i32 = arith.constant 16 : i32
    %52 = vector.broadcast %c16_i32 : i32 to vector<8x16xi32>
    %53 = arith.select %51, %49, %52 : vector<8x16xi1>, vector<8x16xi32>
    %cst_19 = arith.constant dense<2147483647> : vector<8xi32>
    %54 = vector.multi_reduction <minsi>, %53, %cst_19 [1] : vector<8x16xi32> to vector<8xi32>
    %55 = vector.shape_cast %54 : vector<8xi32> to vector<8x1xi32>
    %56 = arith.cmpi eq, %55, %3 : vector<8x1xi32>
    %cst_20 = arith.constant 1.000000e+00 : f32
    %cst_21 = arith.constant 0.000000e+00 : f32
    %57 = vector.broadcast %cst_20 : f32 to vector<8x1xf32>
    %58 = vector.broadcast %cst_21 : f32 to vector<8x1xf32>
    %59 = arith.select %56, %57, %58 : vector<8x1xi1>, vector<8x1xf32>
    %60 = vector.shape_cast %59 : vector<8x1xf32> to vector<1x8x1xf32>
    %cst_22 = arith.constant dense<0.000000e+00> : vector<1xf32>
    %61 = vector.multi_reduction <add>, %60, %cst_22 [1, 2] : vector<1x8x1xf32> to vector<1xf32>
    %62 = vector.shape_cast %61 : vector<1xf32> to vector<1x1x1xf32>
    %63 = vector.extract %62[0, 0, 0] : f32 from vector<1x1x1xf32>
    %c0_23 = arith.constant 0 : index
    %c0_24 = arith.constant 0 : index
    %64 = vector.load %arg3[%c0_23, %c0_24] : memref<8x128xbf16, #tpu.memory_space<vmem>>, vector<8x128xbf16>
    %cst_25 = arith.constant dense<0.000000e+00> : vector<8x16xf32>
    %65 = tpu.matmul %64, %25, %cst_25 {dimension_numbers = #tpu.dot_dimension_numbers<[1], [0], [0], [1], [0, 0, 1, 1], [], []>} : vector<8x128xbf16>, vector<128x16xbf16>, vector<8x16xf32> -> vector<8x16xf32>
    %cst_26 = arith.constant 1.000000e+01 : f32
    %66 = vector.broadcast %cst_26 : f32 to vector<8x16xf32>
    %67 = arith.mulf %65, %66 : vector<8x16xf32>
    %68 = arith.subf %67, %23 : vector<8x16xf32>
    %cst_27 = arith.constant dense<0xFF800000> : vector<8xf32>
    %69 = vector.multi_reduction <maximumf>, %68, %cst_27 [1] : vector<8x16xf32> to vector<8xf32>
    %70 = vector.shape_cast %69 : vector<8xf32> to vector<8x1xf32>
    %71 = vector.broadcast %70 : vector<8x1xf32> to vector<8x16xf32>
    %72 = arith.subf %68, %71 : vector<8x16xf32>
    %73 = math.exp %72 : vector<8x16xf32>
    %cst_28 = arith.constant dense<0.000000e+00> : vector<8xf32>
    %74 = vector.multi_reduction <add>, %73, %cst_28 [1] : vector<8x16xf32> to vector<8xf32>
    %75 = vector.shape_cast %74 : vector<8xf32> to vector<8x1xf32>
    %76 = math.log %75 : vector<8x1xf32>
    %77 = arith.addf %70, %76 : vector<8x1xf32>
    %78 = arith.subf %77, %24 : vector<8x1xf32>
    %79 = vector.shape_cast %78 : vector<8x1xf32> to vector<1x8x1xf32>
    %cst_29 = arith.constant dense<0.000000e+00> : vector<1xf32>
    %80 = vector.multi_reduction <add>, %79, %cst_29 [1, 2] : vector<1x8x1xf32> to vector<1xf32>
    %81 = vector.shape_cast %80 : vector<1xf32> to vector<1x1x1xf32>
    %82 = vector.extract %81[0, 0, 0] : f32 from vector<1x1x1xf32>
    %83 = tpu.iota {dimensions = array<i32: 0>} : vector<8x128xi32>
    %84 = tpu.iota {dimensions = array<i32: 1>} : vector<8x128xi32>
    %c0_i32 = arith.constant 0 : i32
    %85 = vector.broadcast %c0_i32 : i32 to vector<8x128xi32>
    %86 = arith.cmpi eq, %83, %85 : vector<8x128xi32>
    %c128_i32 = arith.constant 128 : i32
    %87 = vector.broadcast %c128_i32 : i32 to vector<8x128xi32>
    %88 = arith.select %86, %84, %87 : vector<8x128xi1>, vector<8x128xi32>
    %c0_i32_30 = arith.constant 0 : i32
    %89 = vector.broadcast %c0_i32_30 : i32 to vector<8x128xi32>
    %90 = arith.cmpi eq, %88, %89 : vector<8x128xi32>
    %c1_i32 = arith.constant 1 : i32
    %91 = vector.broadcast %c1_i32 : i32 to vector<8x128xi32>
    %92 = arith.cmpi eq, %88, %91 : vector<8x128xi32>
    %c2_i32 = arith.constant 2 : i32
    %93 = vector.broadcast %c2_i32 : i32 to vector<8x128xi32>
    %94 = arith.cmpi eq, %88, %93 : vector<8x128xi32>
    %cst_31 = arith.constant 0.000000e+00 : f32
    %95 = vector.broadcast %63 : f32 to vector<8x128xf32>
    %96 = vector.broadcast %cst_31 : f32 to vector<8x128xf32>
    %97 = arith.select %94, %95, %96 : vector<8x128xi1>, vector<8x128xf32>
    %98 = vector.broadcast %82 : f32 to vector<8x128xf32>
    %99 = arith.select %92, %98, %97 : vector<8x128xi1>, vector<8x128xf32>
    %100 = vector.broadcast %44 : f32 to vector<8x128xf32>
    %101 = arith.select %90, %100, %99 : vector<8x128xi1>, vector<8x128xf32>
    %c0_32 = arith.constant 0 : index
    %c0_33 = arith.constant 0 : index
    %c0_34 = arith.constant 0 : index
    %102 = vector.load %arg5[%c0_32, %c0_33, %c0_34] : memref<1x8x128xf32, #tpu.memory_space<vmem>>, vector<1x8x128xf32>
    %103 = vector.shape_cast %102 : vector<1x8x128xf32> to vector<8x128xf32>
    %104 = vector.shape_cast %101 : vector<8x128xf32> to vector<1x8x128xf32>
    tpu.vector_store %arg5[%c0_32, %c0_33, %c0_34], %104 {strides = array<i32>} : memref<1x8x128xf32, #tpu.memory_space<vmem>>, vector<1x8x128xf32>,
    return
  }
  func.func @transform_0(%arg0: i32) -> (i32, i32) {
    %c0_i32 = arith.constant 0 : i32
    %c0_i32_0 = arith.constant 0 : i32
    return %arg0, %c0_i32 : i32, i32
  }
  func.func @transform_1(%arg0: i32) -> (i32, i32) {
    %c0_i32 = arith.constant 0 : i32
    %c0_i32_0 = arith.constant 0 : i32
    return %arg0, %c0_i32 : i32, i32
  }
  func.func @transform_2(%arg0: i32) -> (i32, i32) {
    %c0_i32 = arith.constant 0 : i32
    %c0_i32_0 = arith.constant 0 : i32
    return %arg0, %c0_i32 : i32, i32
  }
  func.func @transform_3(%arg0: i32) -> (i32, i32) {
    %c0_i32 = arith.constant 0 : i32
    %c0_i32_0 = arith.constant 0 : i32
    %c0_i32_1 = arith.constant 0 : i32
    return %c0_i32, %c0_i32_0 : i32, i32
  }
  func.func @transform_4(%arg0: i32) -> (i32, i32, i32) {
    %c0_i32 = arith.constant 0 : i32
    %c0_i32_0 = arith.constant 0 : i32
    %c0_i32_1 = arith.constant 0 : i32
    return %arg0, %c0_i32, %c0_i32_0 : i32, i32, i32
  }
}

</mosaic_0001>

<bundles_post_ra>
// kernel: tpu_custom_call.1
= control target key start
LH: loop header
LB: loop body
LE: loop exit
PB: predicated region body
PF: predicated region fallthrough
CT: control target
= control target key end

     0   :  { %v406_v1 = vmov 0.0   ;;  %vm407_vm0 = vmmov 0   ;;  %s517_s0 = inlined_call_operand.vmem [shape: f32[8,1], index: 0, kind: input, shape index: {}]   ;;  %s518_s1 = inlined_call_operand.vmem [shape: bf16[8,128], index: 1, kind: input, shape index: {}]   ;;  %s519_s2 = inlined_call_operand.vmem [shape: bf16[8,128], index: 2, kind: input, shape index: {}]   ;;  %s520_s3 = inlined_call_operand.vmem [shape: bf16[128,16], index: 3, kind: input, shape index: {}]   ;;  %s521_s4 = inlined_call_operand.hbm [shape: f32[1,8,128], index: 4, kind: output, shape index: {}]  }
   0x1   :  { %v368_v0 = vld [vmem:[%s520_s3 + $0x38] sm:$0xff]   ;;  %319 = vmatprep.subr.bf16.mxu0 %v406_v1  ;;  %339 = vmatprep.subr.bf16.mxu1 %v406_v1  ;;  %v369_v2 = vld [vmem:[%s520_s3 + $0x30] sm:$0xff]   ;;  %v370_v3 = vld [vmem:[%s520_s3 + $0x28] sm:$0xff]  }
   0x2   :  { %320 = vmatpush3.bf16.msra.mxu0 %v368_v0  ;;  %340 = vmatpush3.bf16.msra.mxu1 %v368_v0 }
   0x3   :  { %321 = vmatprep.subr.bf16.mxu0 %v406_v1  ;;  %341 = vmatprep.subr.bf16.mxu1 %v406_v1 }
   0x4   :  { %335 = vmatprep.mubr.msk.bf16.mxu0 %vm407_vm0, %v406_v1  ;;  %355 = vmatprep.mubr.msk.bf16.mxu1 %vm407_vm0, %v406_v1 }
   0x6   :  { %322 = vmatpush3.bf16.msra.mxu0 %v369_v2  ;;  %342 = vmatpush3.bf16.msra.mxu1 %v369_v2 }
   0x7   :  { %323 = vmatprep.subr.bf16.mxu0 %v406_v1  ;;  %343 = vmatprep.subr.bf16.mxu1 %v406_v1 }
   0x8   :  { %9 = vsyncpa [#allocation3], 0  ;;  %v371_v4 = vld [vmem:[%s520_s3 + $0x20] sm:$0xff]   ;;  %v372_v5 = vld [vmem:[%s520_s3 + $0x18] sm:$0xff]   ;;  %v20_v11 = vlaneseq  ;;  %vm143_vm5 = vcmask 130048   ;;  %vm157_vm8 = vcmask 7168  }
   0x9   :  { %v373_v6 = vld [vmem:[%s520_s3 + $0x10] sm:$0xff]   ;;  %v374_v7 = vld [vmem:[%s520_s3 + $0x8] sm:$0xff]   ;;  %v375_v8 = vld [vmem:[%s520_s3] sm:$0xff]   ;;  %s408_s9 = smov [#allocation2]  }
   0xa   :  { %324 = vmatpush3.bf16.msra.mxu0 %v370_v3  ;;  %344 = vmatpush3.bf16.msra.mxu1 %v370_v3  ;;  %v52_v9 = vld [vmem:[%s518_s1] sm:$0xf]  ;;  %v482_v12 = vshrl.u32 %v20_v11, 7  ;;  %v484_v13 = vand.u32 127, %v20_v11  ;;  %s284_s10 = sshll.u32 %s408_s9, 4  ;;  %s285_s10 = int_to_ptr.vmem [resolvable:$true] %s284_s10 }
   0xb   :  { %325 = vmatprep.subr.bf16.mxu0 %v406_v1  ;;  %345 = vmatprep.subr.bf16.mxu1 %v406_v1  ;;  %v200_v10 = vld [vmem:[%s519_s2] sm:$0xf]  ;;  %s384_s12 = scalar_lea.vmem %s285_s10, 128  ;;  %p389_p1 = scmp.lt.s32.totalorder %s285_s10, %s285_s10 }
   0xc   :  { %v31_v14 = vadd.s32 8, %v482_v12  ;;  %vm26_vm1 = vcmp.lt.s32.totalorder %v484_v13, 8  ;;  %vm27_vm2 = vcmp.eq.s32.totalorder %v484_v13, %v482_v12  ;;  %v168_v31 = vadd.s32 8, %v484_v13  ;;  %v35_v56 = vld [vmem:[%s517_s0] sm:$0xff]  ;;  %p385_p0 = scmp.ne.s32.totalorder %s285_s10, %s384_s12  ;;  %p390_p2 = scmp.lt.s32.totalorder %s384_s12, %s384_s12 }
   0xd   :  { %vm28_vm3 = vmand %vm26_vm1, %vm27_vm2  ;;  %v300_v32 = vadd.s32 4294967288, %v484_v13  ;;  %vm266_vm10 = vcmp.eq.s32.totalorder %v482_v12, 0 }
   0xe   :  { %326 = vmatpush3.bf16.msra.mxu0 %v371_v4  ;;  %346 = vmatpush3.bf16.msra.mxu1 %v371_v4  ;;  %vm32_vm4 = vcmp.eq.s32.totalorder %v484_v13, %v31_v14  ;;  %v29_v15 = vsel %vm28_vm3, 1e+09, %v406_v1  ;;  %p391_p3 = por %p390_p2, %p389_p1 }
   0xf   :  { %327 = vmatprep.subr.bf16.mxu0 %v406_v1  ;;  %347 = vmatprep.subr.bf16.mxu1 %v406_v1  ;;  %v33_v18 = vsel %vm32_vm4, 1e+09, %v406_v1  ;;  %v170_v33 = vsel %vm26_vm1, %v168_v31, %v300_v32  ;;  %v267_v31 = vsel %vm266_vm10, %v484_v13, 128 }
  0x10   :  { %vm270_vm11 = vcmp.eq.s32.totalorder %v267_v31, 2  ;;  %vm269_vm12 = vcmp.eq.s32.totalorder %v267_v31, 1  ;;  %vm268_vm13 = vcmp.eq.s32.totalorder %v267_v31, 0  ;;  %p392_p4 = pnand %p391_p3, %p385_p0 }
  0x12   :  { %328 = vmatpush3.bf16.msra.mxu0 %v372_v5  ;;  %348 = vmatpush3.bf16.msra.mxu1 %v372_v5 }
  0x13   :  { %329 = vmatprep.subr.bf16.mxu0 %v406_v1  ;;  %349 = vmatprep.subr.bf16.mxu1 %v406_v1 }
  0x16   :  { %330 = vmatpush3.bf16.msra.mxu0 %v373_v6  ;;  %350 = vmatpush3.bf16.msra.mxu1 %v373_v6 }
  0x17   :  { %331 = vmatprep.subr.bf16.mxu0 %v406_v1  ;;  %351 = vmatprep.subr.bf16.mxu1 %v406_v1 }
  0x1a   :  { %332 = vmatpush3.bf16.msra.mxu0 %v374_v7  ;;  %352 = vmatpush3.bf16.msra.mxu1 %v374_v7 }
  0x1b   :  { %333 = vmatprep.subr.bf16.mxu0 %v406_v1  ;;  %353 = vmatprep.subr.bf16.mxu1 %v406_v1 }
  0x1e   :  { %334 = vmatpush3.bf16.msra.mxu0 %v375_v8  ;;  %354 = vmatpush3.bf16.msra.mxu1 %v375_v8 }
  0x21   :  { %336 = vmatmul.mubr.bf16.vlgmr.msra.gmra.mxu0 %v52_v9  ;;  %356 = vmatmul.mubr.bf16.vlgmr.msra.gmra.mxu1 %v200_v10 }
  0xe1   :  { %v135_v16 = vpop.f32.mrf.mxu0  ;;  %v235_v17 = vpop.f32.mrf.mxu1 }
  0xe2   :  { %v141_v19 = vmul.f32 10.0, %v135_v16  ;;  %v241_v20 = vmul.f32 10.0, %v235_v17 }
  0xe3   :  { %v337_v21 = vpop.f32.mrf.mxu0  ;;  %v357_v22 = vpop.f32.mrf.mxu1 }
  0xe4   :  { %v142_v23 = vsub.f32 %v141_v19, %v29_v15  ;;  %v242_v24 = vsub.f32 %v241_v20, %v33_v18 }
  0xe5   :  { %v138_v25 = vpop.f32.mrf.mxu0  ;;  %v238_v26 = vpop.f32.mrf.mxu1 }
  0xe6   :  { %v144_v27 = vsel %vm143_vm5, %v142_v23, -inf  ;;  %v243_v30 = vsel %vm143_vm5, %v242_v24, -inf }
  0xe7   :  { %v338_v28 = vpop.f32.mrf.mxu0  ;;  %145 = vmax.xlane.f32.xlu0 %v144_v27  ;;  %v358_v29 = vpop.f32.mrf.mxu1 }
  0xeb   :  { %244 = vmax.xlane.f32.xlu0 %v243_v30 }
 0x170   :  { %v146_v34 = vpop.xlane.xlu0 %145 }
 0x171   :  { %v147_v35 = vsub.f32 %v142_v23, %v146_v34  ;;  %vm171_vm6 = vcmp.eq.f32.partialorder %v142_v23, %v146_v34 }
 0x172   :  { %v172_v36 = vsel %vm171_vm6, %v170_v33, 16 }
 0x173   :  { %v148_v37 = vmul.f32 1.442695, %v147_v35  ;;  %v173_v38 = vsel %vm143_vm5, %v172_v36, 2147483647 }
 0x174   :  { %v245_v39 = vpop.xlane.xlu0 %244  ;;  %v175_v40 = vshra.s32 %v173_v38, 16  ;;  %v174_v48 = vand.u32 65535, %v173_v38 }
 0x175   :  { %376 = vpow2.f32 %v148_v37  ;;  %v246_v41 = vsub.f32 %v242_v24, %v245_v39 }
 0x176   :  { %v177_v42 = vcvt.s32.f32 %v175_v40  ;;  %v176_v50 = vcvt.s32.f32 %v174_v48 }
 0x177   :  { %v247_v43 = vmul.f32 1.442695, %v246_v41 }
 0x178   :  { %178 = vmin.xlane.f32.xlu1 %v177_v42 }
 0x179   :  { %378 = vpow2.f32 %v247_v43 }
 0x182   :  { %v377_v44 = vpop.eup %376 }
 0x183   :  { %v150_v45 = vsel %vm143_vm5, %v377_v44, 0.0 }
 0x184   :  { %151 = vadd.xlane.f32.xlu1 %v150_v45 }
 0x186   :  { %v379_v46 = vpop.eup %378 }
 0x187   :  { %v249_v47 = vsel %vm143_vm5, %v379_v46, 0.0 }
 0x188   :  { %250 = vadd.xlane.f32.xlu0 %v249_v47 }
 0x201   :  { %v179_v49 = vpop.xlane.xlu1 %178 }
 0x202   :  { %vm180_vm7 = vcmp.eq.f32.partialorder %v177_v42, %v179_v49  ;;  %v185_v2 = vcvt.f32.s32 %v179_v49 }
 0x203   :  { %v181_v51 = vsel %vm180_vm7, %v176_v50, inf }
 0x204   :  { %182 = vmin.xlane.f32.xlu1 %v181_v51  ;;  %v186_v4 = vshll.u32 %v185_v2, 16 }
 0x20d   :  { %v152_v52 = vpop.xlane.xlu1 %151 }
 0x20e   :  { %380 = vlog2.f32 %v152_v52 }
 0x211   :  { %v251_v53 = vpop.xlane.xlu0 %250 }
 0x212   :  { %382 = vlog2.f32 %v251_v53 }
 0x21b   :  { %v381_v54 = vpop.eup %380 }
 0x21c   :  { %v154_v55 = vmul.f32 0.6931472, %v381_v54 }
 0x21e   :  { %v155_v57 = vadd.f32 %v154_v55, %v146_v34 }
 0x21f   :  { %v383_v58 = vpop.eup %382 }
 0x220   :  { %v253_v59 = vmul.f32 0.6931472, %v383_v58  ;;  %v156_v60 = vsub.f32 %v155_v57, %v35_v56 }
 0x222   :  { %v158_v61 = vsel %vm157_vm8, %v156_v60, 0.0  ;;  %v254_v62 = vadd.f32 %v253_v59, %v245_v39 }
 0x223   :  { %159 = vadd.xlane.f32.xlu0 %v158_v61 }
 0x224   :  { %v255_v63 = vsub.f32 %v254_v62, %v35_v56 }
 0x226   :  { %v256_v0 = vsel %vm157_vm8, %v255_v63, 0.0 }
 0x227   :  { %257 = vadd.xlane.f32.xlu0 %v256_v0 }
 0x28d   :  { %v183_v3 = vpop.xlane.xlu1 %182 }
 0x28e   :  { %v184_v5 = vcvt.f32.s32 %v183_v3 }
 0x290   :  { %v187_v6 = vadd.s32 %v186_v4, %v184_v5 }
 0x292   :  { %vm188_vm9 = vcmp.eq.s32.totalorder %v187_v6, %v482_v12 }
 0x293   :  { %v189_v7 = vsel %vm188_vm9, 1.0, %v406_v1 }
 0x294   :  { %v190_v8 = vsel %vm157_vm8, %v189_v7, 0.0 }
 0x295   :  { %191 = vadd.xlane.f32.xlu1 %v190_v8 }
 0x2ac   :  { %v160_v9 = vpop.xlane.xlu0 %159 }
 0x2ad   :  { %v161_v10 = vrot.slane %v160_v9, 4 }
 0x2af   :  { %v162_v11 = vadd.f32 %v161_v10, %v160_v9 }
 0x2b0   :  { %v258_v18 = vpop.xlane.xlu0 %257 }
 0x2b1   :  { %v163_v14 = vrot.slane %v162_v11, 2  ;;  %v259_v19 = vrot.slane %v258_v18, 4 }
 0x2b3   :  { %v164_v15 = vadd.f32 %v163_v14, %v162_v11  ;;  %v260_v20 = vadd.f32 %v259_v19, %v258_v18 }
 0x2b5   :  { %v165_v16 = vrot.slane %v164_v15, 1  ;;  %v261_v21 = vrot.slane %v260_v20, 2 }
 0x2b7   :  { %v166_v17 = vadd.f32 %v165_v16, %v164_v15  ;;  %v262_v25 = vadd.f32 %v261_v21, %v260_v20 }
 0x2b9   :  { %359 = vpush %v166_v17  ;;  %v263_v27 = vrot.slane %v262_v25, 1 }
 0x2bb   :  { %v264_v30 = vadd.f32 %v263_v27, %v262_v25 }
 0x2ea   :  { %s360_s0 = spop %359 }
 0x2eb   :  { %v275_v35 = vstv %s360_s0 }
 0x31e   :  { %v192_v22 = vpop.xlane.xlu1 %191 }
 0x31f   :  { %v193_v23 = vrot.slane %v192_v22, 4 }
 0x321   :  { %v194_v24 = vadd.f32 %v193_v23, %v192_v22 }
 0x323   :  { %v195_v1 = vrot.slane %v194_v24, 2 }
 0x325   :  { %v196_v26 = vadd.f32 %v195_v1, %v194_v24 }
 0x327   :  { %v197_v28 = vrot.slane %v196_v26, 1 }
 0x329   :  { %v198_v29 = vadd.f32 %v197_v28, %v196_v26 }
 0x32b   :  { %361 = vpush %v198_v29 }
 0x32c   :  { %363 = vpush %v264_v30 }
 0x35c   :  { %s362_s3 = spop %361 }
 0x35d   :  { %v271_v32 = vstv %s362_s3  ;;  %s364_s11 = spop %363 }
 0x35e   :  { %v272_v33 = vsel %vm270_vm11, %v271_v32, 0.0  ;;  %v273_v34 = vstv %s364_s11 }
 0x35f   :  { %v274_v36 = vsel %vm269_vm12, %v273_v34, %v272_v33 }
 0x360   :  { %v276_v37 = vsel %vm268_vm13, %v275_v35, %v274_v36 }
 0x361   :  { %277 = vst [vmem:[#allocation2] sm:$0xff] %v276_v37 }
 0x362   :  { %395 = shalt.err (!%p392_p4)
}
 0x363   :  { %287 = dma.vmem_to_hbm [thread:$0]  %s285_s10, 128, %s521_s4, [#allocation3]  }
 0x364   :  { %404 = dma.done.wait [#allocation3], 128  }
 0x365   :  { %405 = vsyncadd [#allocation3], 4294967168 }
 0x366   :  { %291 = vsyncpa [#allocation3], 1 }

</bundles_post_ra>
